<compile_context>
chip_gen: v5e
topology: v5e:2x2
jax: 0.10.0
libtpu: 0.0.40
codegen_flags: <defaults>
</compile_context>

<pallas_src>
import jax
import jax.numpy as jnp
from jax.experimental import pallas as pl
from jax.experimental.pallas import tpu as pltpu  # noqa: F401  (imported per convention)

N = 50        # x = linspace(0, 1, 50) in the reference
IN_F = 1
HID = 10
OUT_F = 1
LANE = 128    # lane width; pad N to a multiple of this


def feed10_kernel(x_ref, p_ref, o_ref):
    # x_ref: (1, N_pad)   batch along lanes
    # p_ref: (HID, 4)     packed params: col0=w1, col1=b1, col2=w2, col3=b2 (broadcast)
    # o_ref: (1, N_pad)
    x = x_ref[...]                     # (1, N_pad)
    p = p_ref[...]                     # (HID, 4) — single load, then vreg slices
    w1 = p[:, 0:1]                     # (HID, 1)
    b1 = p[:, 1:2]                     # (HID, 1)
    w2 = p[:, 2:3]                     # (HID, 1)
    b2 = p[0:1, 3:4]                   # (1, 1)

    # fc1 + ReLU: broadcast multiply (K == 1, so no degenerate MXU matmul).
    h = jnp.maximum(w1 * x + b1, 0.0)  # (HID, N_pad)

    # fc2: weight, then reduce over the hidden (sublane) axis -> lane-dense (1, N_pad).
    out = jnp.sum(w2 * h, axis=0, keepdims=True)  # (1, N_pad)
    o_ref[...] = out + b2              # broadcast scalar bias, unmasked full-row store


def feed10_forward(x, w1, b1, w2, b2):
    # x: (N, 1); w1: (HID, IN_F); b1: (HID,); w2: (OUT_F, HID); b2: (OUT_F,)
    n = x.shape[0]
    n_pad = ((n + LANE - 1) // LANE) * LANE

    # Batch on the lane axis, zero-padded to a full lane width.
    x_row = jnp.zeros((1, n_pad), x.dtype).at[0, :n].set(x[:, 0])

    # Pack all 4 parameter tensors into ONE (HID, 4) block -> a single DMA stream.
    params = jnp.stack(
        [
            w1.reshape(HID),                       # col 0: fc1 weight
            b1.reshape(HID),                       # col 1: fc1 bias
            w2.reshape(HID),                       # col 2: fc2 weight
            jnp.full((HID,), b2.reshape(())[()], dtype=x.dtype),  # col 3: fc2 bias
        ],
        axis=1,
    )  # (HID, 4)

    full = lambda shape: pl.BlockSpec(shape, lambda: (0,) * len(shape))
    out_row = pl.pallas_call(
        feed10_kernel,
        out_shape=jax.ShapeDtypeStruct((1, n_pad), x.dtype),
        grid=(),
        in_specs=[full((1, n_pad)), full((HID, 4))],
        out_specs=full((1, n_pad)),
    )(x_row, params)
    # NOTE: if N ever scales beyond a toy size, add grid=(pl.cdiv(n_pad, 256),) over the
    # lane/batch axis with dimension_semantics=("parallel",) for v7x's 2 TensorCores.

    return out_row[0, :n].reshape(n, OUT_F)


def reference_forward(x, w1, b1, w2, b2):
    h = jnp.maximum(x @ w1.T + b1, 0.0)
    return h @ w2.T + b2


if __name__ == "__main__":
    key = jax.random.PRNGKey(0)
    k1, k2, k3, k4 = jax.random.split(key, 4)

    # Deterministic parameter init (PyTorch-Linear-like uniform bounds).
    bound1 = 1.0 / (IN_F ** 0.5)
    w1 = jax.random.uniform(k1, (HID, IN_F), jnp.float32, -bound1, bound1)
    b1 = jax.random.uniform(k2, (HID,), jnp.float32, -bound1, bound1)
    bound2 = 1.0 / (HID ** 0.5)
    w2 = jax.random.uniform(k3, (OUT_F, HID), jnp.float32, -bound2, bound2)
    b2 = jax.random.uniform(k4, (OUT_F,), jnp.float32, -bound2, bound2)

    # Input: x = linspace(0, 1, 50) as a (50, 1) batch of scalars.
    x = jnp.linspace(0.0, 1.0, N, dtype=jnp.float32).reshape(N, IN_F)

    out = feed10_forward(x, w1, b1, w2, b2)
    out = jax.block_until_ready(out)

    ref = reference_forward(x, w1, b1, w2, b2)
    assert out.shape == (N, OUT_F)
    assert jnp.allclose(out, ref, atol=1e-5, rtol=1e-5)
    print("KERNEL_OK")
</pallas_src>

<mosaic_0001>
module attributes {stable_mosaic.version = 11 : i64} {
  func.func @feed10_kernel(%arg0: memref<1x128xf32, #tpu.memory_space<vmem>>, %arg1: memref<10x4xf32, #tpu.memory_space<vmem>>, %arg2: memref<1x128xf32, #tpu.memory_space<vmem>>) attributes {dimension_semantics = [], scalar_prefetch = 0 : i64, scratch_operands = 0 : i64, tpu.core_type = #tpu.core_type<tc>} {
    %c0 = arith.constant 0 : index
    %c0_0 = arith.constant 0 : index
    %0 = vector.load %arg0[%c0, %c0_0] : memref<1x128xf32, #tpu.memory_space<vmem>>, vector<1x128xf32>
    %c0_1 = arith.constant 0 : index
    %c0_2 = arith.constant 0 : index
    %1 = vector.load %arg1[%c0_1, %c0_2] : memref<10x4xf32, #tpu.memory_space<vmem>>, vector<10x4xf32>
    %2 = vector.extract_strided_slice %1 {offsets = [0, 0], sizes = [10, 1], strides = [1, 1]} : vector<10x4xf32> to vector<10x1xf32>
    %3 = vector.extract_strided_slice %1 {offsets = [0, 1], sizes = [10, 1], strides = [1, 1]} : vector<10x4xf32> to vector<10x1xf32>
    %4 = vector.extract_strided_slice %1 {offsets = [0, 2], sizes = [10, 1], strides = [1, 1]} : vector<10x4xf32> to vector<10x1xf32>
    %5 = vector.extract_strided_slice %1 {offsets = [0, 3], sizes = [1, 1], strides = [1, 1]} : vector<10x4xf32> to vector<1x1xf32>
    %6 = vector.broadcast %2 : vector<10x1xf32> to vector<10x128xf32>
    %7 = vector.broadcast %0 : vector<1x128xf32> to vector<10x128xf32>
    %8 = arith.mulf %6, %7 : vector<10x128xf32>
    %9 = vector.broadcast %3 : vector<10x1xf32> to vector<10x128xf32>
    %10 = arith.addf %8, %9 : vector<10x128xf32>
    %cst = arith.constant 0.000000e+00 : f32
    %11 = vector.broadcast %cst : f32 to vector<10x128xf32>
    %12 = arith.maximumf %10, %11 : vector<10x128xf32>
    %13 = vector.broadcast %4 : vector<10x1xf32> to vector<10x128xf32>
    %14 = arith.mulf %13, %12 : vector<10x128xf32>
    %cst_3 = arith.constant dense<0.000000e+00> : vector<128xf32>
    %15 = vector.multi_reduction <add>, %14, %cst_3 [0] : vector<10x128xf32> to vector<128xf32>
    %16 = vector.shape_cast %15 : vector<128xf32> to vector<1x128xf32>
    %17 = vector.broadcast %5 : vector<1x1xf32> to vector<1x128xf32>
    %18 = arith.addf %16, %17 : vector<1x128xf32>
    %c0_4 = arith.constant 0 : index
    %c0_5 = arith.constant 0 : index
    %19 = vector.load %arg2[%c0_4, %c0_5] : memref<1x128xf32, #tpu.memory_space<vmem>>, vector<1x128xf32>
    tpu.vector_store %arg2[%c0_4, %c0_5], %18 {strides = array<i32>} : memref<1x128xf32, #tpu.memory_space<vmem>>, vector<1x128xf32>,
    return
  }
}

</mosaic_0001>

<bundles_post_ra>
// kernel: tpu_custom_call.1
= control target key start
LH: loop header
LB: loop body
LE: loop exit
PB: predicated region body
PF: predicated region fallthrough
CT: control target
= control target key end

     0   :  { %v119_v1 = vmov 1   ;;  %v120_v2 = vmov 0   ;;  %s151_s0 = inlined_call_operand.vmem [shape: f32[1,128], index: 0, kind: input, shape index: {}]   ;;  %s152_s1 = inlined_call_operand.vmem [shape: f32[10,4], index: 1, kind: input, shape index: {}]   ;;  %s153_s2 = inlined_call_operand.hbm [shape: f32[1,128], index: 2, kind: output, shape index: {}]  }
   0x1   :  { %v14_v0 = vld [vmem:[%s152_s1 + $0x8] sm:$0x3]  ;;  %89 = vset.pattern.permute.xlu1 %v119_v1  ;;  %88 = vset.pattern.permute.xlu0 %v120_v2 }
   0x2   :  { %7 = vsyncpa [#allocation3], 0  ;;  %35 = vperm.xlu1 %89, %v14_v0   ;;  %22 = vperm.xlu0 %88, %v14_v0   ;;  %v121_v3 = vmov 2   ;;  %v13_v4 = vld [vmem:[%s152_s1] sm:$0xff]  ;;  %v122_v5 = vmov 3   ;;  %vm52_vm0 = vcmask 1041408  }
   0x3   :  { %90 = vset.pattern.permute.xlu2 %v121_v3  ;;  %v92_v6 = vld [vmem:[%s151_s0] ss:$0 sm:$0xff]  ;;  %s123_s0 = smov [#allocation2]   ;;  %s74_s17 = sshll.u32 %s153_s2, 4  ;;  %s75_s17 = int_to_ptr.hbm [resolvable:$true] %s74_s17 }
   0x4   :  { %47 = vperm.xlu2 %90, %v14_v0   ;;  %s72_s1 = sshll.u32 %s123_s0, 4  ;;  %s73_s1 = int_to_ptr.vmem [resolvable:$true] %s72_s1 }
   0xa   :  { %31 = vperm.xlu1 %89, %v13_v4   ;;  %17 = vperm.xlu0 %88, %v13_v4  }
   0xc   :  { %43 = vperm.xlu2 %90, %v13_v4  }
  0x12   :  { %91 = vset.pattern.permute.xlu0 %v122_v5 }
  0x13   :  { %62 = vperm.xlu0 %91, %v13_v4  }
  0x5e   :  { %v48_v10 = vpop.permute.xlu2 %47 }
  0x66   :  { %v44_v19 = vpop.permute.xlu2 %43 }
  0x74   :  { %v36_v7 = vpop.permute.xlu1 %35  ;;  %v23_v8 = vpop.permute.xlu0 %22 }
  0x75   :  { %v29_v9 = vmul.f32 %v92_v6, %v23_v8 }
  0x77   :  { %v39_v11 = vadd.f32 %v36_v7, %v29_v9 }
  0x79   :  { %v41_v12 = vmax.f32 %v39_v11, 0.0 }
  0x7b   :  { %v51_v17 = vmul.f32 %v48_v10, %v41_v12 }
  0x7c   :  { %v18_v13 = vpop.permute.xlu0 %17  ;;  %v32_v15 = vpop.permute.xlu1 %31 }
  0x7d   :  { %v28_v14 = vmul.f32 %v92_v6, %v18_v13  ;;  %v53_v21 = vsel %vm52_vm0, %v51_v17, 0.0 }
  0x7f   :  { %v38_v16 = vadd.f32 %v32_v15, %v28_v14 }
  0x81   :  { %v40_v18 = vmax.f32 %v38_v16, 0.0 }
  0x83   :  { %v50_v20 = vmul.f32 %v44_v19, %v40_v18 }
  0x85   :  { %v54_v22 = vadd.f32 %v53_v21, %v50_v20  ;;  %v63_v28 = vpop.permute.xlu0 %62 }
  0x87   :  { %v55_v23 = vrot.slane %v54_v22, 4 }
  0x89   :  { %v56_v24 = vadd.f32 %v55_v23, %v54_v22 }
  0x8b   :  { %v57_v25 = vrot.slane %v56_v24, 2 }
  0x8d   :  { %v58_v26 = vadd.f32 %v57_v25, %v56_v24 }
  0x8f   :  { %v59_v27 = vrot.slane %v58_v26, 1 }
  0x91   :  { %v60_v29 = vadd.f32 %v59_v27, %v58_v26 }
  0x93   :  { %v65_v30 = vadd.f32 %v63_v28, %v60_v29 }
  0x95   :  { %66 = vst [vmem:[#allocation2] sm:$0x1] %v65_v30 }
  0x96   :  { %77 = dma.vmem_to_hbm [thread:$0]  %s73_s1, 16, %s75_s17, [#allocation3]  }
  0x97   :  { %117 = dma.done.wait [#allocation3], 16  }
  0x98   :  { %118 = vsyncadd [#allocation3], 4294967280 }
  0x99   :  { %82 = vsyncpa [#allocation3], 1 }

</bundles_post_ra>
